<compile_context>
chip_gen: v7x
topology: tpu7x:2x2x1
jax: 0.10.0
libtpu: 0.0.40
codegen_flags: <defaults>
</compile_context>

<pallas_src>
import functools

import numpy as np
import jax
import jax.numpy as jnp
from jax.experimental import pallas as pl
from jax.experimental.pallas import tpu as pltpu

_LANE = 128
_VMEM_BUDGET = 48 * 1024 * 1024   # conservative: fits v5e/v6e (128 MiB) and v7x (64 MiB)


# ----------------------------- Pallas kernel -------------------------------
def _convblock_kernel(patch_ref, w_ref, shift_ref, out_ref):
    # patch_ref: (tm, K)   w_ref: (K, tn)   shift_ref: (1, tn) f32
    acc = jnp.dot(patch_ref[...], w_ref[...], preferred_element_type=jnp.float32)
    y = acc + shift_ref[...]                                # folded BatchNorm (eval)
    out = y * jnp.clip(y + 3.0, 0.0, 6.0) * (1.0 / 6.0)     # HSwish
    out_ref[...] = out.astype(out_ref.dtype)


def _pick_m_tile(M, K, tn, in_bytes, out_bytes):
    """Largest M tile fitting the VMEM budget.  Prefers (a) a single grid step
    when the whole problem fits, (b) tiles that divide M exactly so no padded
    copy of the patch matrix has to be materialised in HBM."""
    def need(tm, nbuf):
        return (nbuf * tm * K * in_bytes        # pipelined patch tiles
                + K * tn * in_bytes             # resident folded weight
                + tn * 4                        # shift
                + nbuf * tm * tn * out_bytes)   # pipelined output tiles

    if M <= 4096 and need(M, 2) <= _VMEM_BUDGET:
        return M                                 # single step, no padding
    best = None
    for tm in (1024, 896, 768, 640, 512, 384, 256, 192, 128, 64, 32, 16, 8):
        if need(tm, 2) > _VMEM_BUDGET:
            continue
        if best is None:
            best = tm
        if M % tm == 0:
            return tm
    return best if best is not None else 8


def _fused_matmul_bn_hswish(patches, w_mat, shift, out_dtype=jnp.float32):
    """patches: (M, K), w_mat: (K, Cout_pad) (BN scale folded in),
    shift: (1, Cout_pad) f32  ->  (M, Cout_pad) in out_dtype."""
    M, K = patches.shape
    Cn = w_mat.shape[1]                           # already a multiple of 128

    # Cout tile: lane-dense; 256-wide blocks for wide (late MobileNet) layers.
    if Cn <= 256:
        tn = Cn
    elif Cn % 256 == 0:
        tn = 256
    else:
        tn = 128

    in_bytes = patches.dtype.itemsize
    out_bytes = np.dtype(out_dtype).itemsize
    tm = _pick_m_tile(M, K, tn, in_bytes, out_bytes)

    M_pad = pl.cdiv(M, tm) * tm
    if M_pad != M:
        # Only the small remainder rows are padded (tm prefers divisors of M).
        patches = jnp.pad(patches, ((0, M_pad - M), (0, 0)))

    grid = (M_pad // tm, Cn // tn)

    vmem_need = (2 * tm * K * in_bytes + K * tn * in_bytes + tn * 4
                 + 2 * tm * tn * out_bytes)
    vmem_limit = int(min(64 * 1024 * 1024,
                         max(32 * 1024 * 1024, 2 * vmem_need)))

    out = pl.pallas_call(
        _convblock_kernel,
        out_shape=jax.ShapeDtypeStruct((M_pad, Cn), out_dtype),
        grid_spec=pltpu.PrefetchScalarGridSpec(
            num_scalar_prefetch=0,
            grid=grid,
            in_specs=[
                pl.BlockSpec((tm, K), lambda i, j: (i, 0)),
                pl.BlockSpec((K, tn), lambda i, j: (0, j)),
                pl.BlockSpec((1, tn), lambda i, j: (0, j)),
            ],
            out_specs=pl.BlockSpec((tm, tn), lambda i, j: (i, j)),
        ),
        compiler_params=pltpu.CompilerParams(
            dimension_semantics=("parallel", "parallel"),
            vmem_limit_bytes=vmem_limit,
        ),
    )(patches, w_mat, shift)
    return out[:M] if M_pad != M else out


# ------------------------------- JAX glue -----------------------------------
def _im2col_nhwc(x_nhwc, k, stride, pad):
    """Extract conv patches: (N, Ho, Wo, k*k*Cin), inner ordering (di, dj, cin),
    matching a (k, k, Cin, Cout)-reshaped weight."""
    if pad:
        x_nhwc = jnp.pad(x_nhwc, ((0, 0), (pad, pad), (pad, pad), (0, 0)))
    N, Hp, Wp, C = x_nhwc.shape
    Ho = (Hp - k) // stride + 1
    Wo = (Wp - k) // stride + 1
    if k == 1 and stride == 1:
        return x_nhwc, Ho, Wo          # pointwise conv: im2col is a free reshape
    cols = []
    for di in range(k):
        for dj in range(k):
            cols.append(
                x_nhwc[:, di:di + stride * Ho:stride, dj:dj + stride * Wo:stride, :])
    # TODO(synk): for k>1 this materialises a k^2-inflated patch matrix in HBM;
    # generating patches inside the kernel via overlapping-row DMA would remove it.
    return jnp.concatenate(cols, axis=-1), Ho, Wo


def conv_block_forward(x_nchw, conv_w, bn_gamma, bn_beta, bn_mean, bn_var,
                       *, kernel_size=1, stride=1, eps=1e-5,
                       compute_dtype=jnp.bfloat16):
    """Forward of ConvBlock.  x_nchw: (N, Cin, H, W); conv_w: (Cout, Cin, k, k)."""
    pad = kernel_size // 2
    Cout, Cin, k, _ = conv_w.shape
    N = x_nchw.shape[0]

    # NCHW -> NHWC, im2col.
    x_nhwc = jnp.transpose(x_nchw, (0, 2, 3, 1))
    patches, Ho, Wo = _im2col_nhwc(x_nhwc, k, stride, pad)
    M = N * Ho * Wo
    K = k * k * Cin
    patches_2d = patches.reshape(M, K).astype(compute_dtype)

    # Fold BatchNorm (inference mode): scale into the weight, shift applied in-kernel.
    scale = bn_gamma / jnp.sqrt(bn_var + eps)                 # (Cout,)
    shift = bn_beta - bn_mean * scale                         # (Cout,)

    # Weight: (Cout, Cin, k, k) -> (k, k, Cin, Cout) -> (K, Cout), scale folded in.
    w_mat = jnp.transpose(conv_w, (2, 3, 1, 0)).reshape(K, Cout)
    w_mat = (w_mat * scale[None, :]).astype(compute_dtype)

    # Pad Cout to a multiple of 128 for lane-dense (unmasked) stores.
    Cout_pad = pl.cdiv(Cout, _LANE) * _LANE
    if Cout_pad != Cout:
        w_mat = jnp.pad(w_mat, ((0, 0), (0, Cout_pad - Cout)))
        shift = jnp.pad(shift, (0, Cout_pad - Cout))          # zeros -> hswish(0)=0
    shift_2d = shift.reshape(1, Cout_pad).astype(jnp.float32)

    out_2d = _fused_matmul_bn_hswish(patches_2d, w_mat, shift_2d,
                                     out_dtype=jnp.float32)

    # (M, Cout_pad) -> slice padded channels -> (N, Ho, Wo, Cout) -> NCHW.
    out = out_2d[:, :Cout].reshape(N, Ho, Wo, Cout)
    return jnp.transpose(out, (0, 3, 1, 2)).astype(x_nchw.dtype)


# ------------------------------ reference -----------------------------------
def _reference(x_nchw, conv_w, bn_gamma, bn_beta, bn_mean, bn_var,
               *, kernel_size=1, stride=1, eps=1e-5):
    pad = kernel_size // 2
    y = jax.lax.conv_general_dilated(
        x_nchw, conv_w, window_strides=(stride, stride),
        padding=[(pad, pad), (pad, pad)],
        dimension_numbers=("NCHW", "OIHW", "NCHW"),
        precision=jax.lax.Precision.HIGHEST)
    scale = (bn_gamma / jnp.sqrt(bn_var + eps)).reshape(1, -1, 1, 1)
    shift = (bn_beta - bn_mean * bn_gamma / jnp.sqrt(bn_var + eps)).reshape(1, -1, 1, 1)
    y = y * scale + shift
    return y * jnp.clip(y + 3.0, 0.0, 6.0) / 6.0


# --------------------------------- main --------------------------------------
if __name__ == "__main__":
    # Small shapes consistent with the module: ConvBlock(inplanes=4, planes=8, k=3, s=1)
    N, Cin, H, W = 2, 4, 16, 16
    Cout, ksize, stride = 8, 3, 1

    key = jax.random.PRNGKey(0)
    kx, kw, kg, kb, km, kv = jax.random.split(key, 6)

    x = jax.random.normal(kx, (N, Cin, H, W), dtype=jnp.float32)
    conv_w = jax.random.normal(kw, (Cout, Cin, ksize, ksize), dtype=jnp.float32) * 0.1
    bn_gamma = 1.0 + 0.1 * jax.random.normal(kg, (Cout,), dtype=jnp.float32)
    bn_beta = 0.1 * jax.random.normal(kb, (Cout,), dtype=jnp.float32)
    bn_mean = 0.1 * jax.random.normal(km, (Cout,), dtype=jnp.float32)
    bn_var = jnp.abs(jax.random.normal(kv, (Cout,), dtype=jnp.float32)) + 0.5

    ref = _reference(x, conv_w, bn_gamma, bn_beta, bn_mean, bn_var,
                     kernel_size=ksize, stride=stride)

    # f32-streamed path: tight correctness check.
    fwd_f32 = jax.jit(functools.partial(conv_block_forward, kernel_size=ksize,
                                        stride=stride, compute_dtype=jnp.float32))
    out_f32 = jax.block_until_ready(
        fwd_f32(x, conv_w, bn_gamma, bn_beta, bn_mean, bn_var))
    assert out_f32.shape == (N, Cout, H, W)
    assert jnp.allclose(out_f32, ref, atol=1e-3, rtol=1e-3), "f32 mismatch vs reference"

    # bf16-streamed path (default / perf): f32 accumulation, relaxed tolerance.
    fwd_bf16 = jax.jit(functools.partial(conv_block_forward, kernel_size=ksize,
                                         stride=stride, compute_dtype=jnp.bfloat16))
    out_bf16 = jax.block_until_ready(
        fwd_bf16(x, conv_w, bn_gamma, bn_beta, bn_mean, bn_var))
    assert out_bf16.shape == (N, Cout, H, W)
    assert jnp.allclose(out_bf16, ref, atol=5e-2, rtol=5e-2), "bf16 mismatch vs reference"

    # TODO(synk): optional SE block (self.se) is None by default and is not implemented.
    print("KERNEL_OK")
</pallas_src>

<mosaic_0001>
module attributes {stable_mosaic.version = 11 : i64} {
  func.func @_convblock_kernel(%arg0: i32, %arg1: i32, %arg2: memref<512x36xf32, #tpu.memory_space<vmem>>, %arg3: memref<36x128xf32, #tpu.memory_space<vmem>>, %arg4: memref<1x128xf32, #tpu.memory_space<vmem>>, %arg5: memref<512x128xf32, #tpu.memory_space<vmem>>) attributes {dimension_semantics = [#tpu.dimension_semantics<parallel>, #tpu.dimension_semantics<parallel>], iteration_bounds = array<i64: 1, 1>, scalar_prefetch = 0 : i64, scratch_operands = 0 : i64, tpu.core_type = #tpu.core_type<tc>, window_params = [{transform_indices = @transform_0, window_bounds = array<i64: 512, 36>}, {transform_indices = @transform_1, window_bounds = array<i64: 36, 128>}, {transform_indices = @transform_2, window_bounds = array<i64: 1, 128>}, {transform_indices = @transform_3, window_bounds = array<i64: 512, 128>}]} {
    %c0 = arith.constant 0 : index
    %c0_0 = arith.constant 0 : index
    %0 = vector.load %arg2[%c0, %c0_0] : memref<512x36xf32, #tpu.memory_space<vmem>>, vector<512x36xf32>
    %c0_1 = arith.constant 0 : index
    %c0_2 = arith.constant 0 : index
    %1 = vector.load %arg3[%c0_1, %c0_2] : memref<36x128xf32, #tpu.memory_space<vmem>>, vector<36x128xf32>
    %cst = arith.constant dense<0.000000e+00> : vector<512x128xf32>
    %2 = tpu.matmul %0, %1, %cst {dimension_numbers = #tpu.dot_dimension_numbers<[1], [0], [0], [1], [0, 0, 1, 1], [], []>} : vector<512x36xf32>, vector<36x128xf32>, vector<512x128xf32> -> vector<512x128xf32>
    %c0_3 = arith.constant 0 : index
    %c0_4 = arith.constant 0 : index
    %3 = vector.load %arg4[%c0_3, %c0_4] : memref<1x128xf32, #tpu.memory_space<vmem>>, vector<1x128xf32>
    %4 = vector.broadcast %3 : vector<1x128xf32> to vector<512x128xf32>
    %5 = arith.addf %2, %4 : vector<512x128xf32>
    %cst_5 = arith.constant 3.000000e+00 : f32
    %6 = vector.broadcast %cst_5 : f32 to vector<512x128xf32>
    %7 = arith.addf %5, %6 : vector<512x128xf32>
    %cst_6 = arith.constant 0.000000e+00 : f32
    %cst_7 = arith.constant 6.000000e+00 : f32
    %8 = vector.broadcast %cst_6 : f32 to vector<512x128xf32>
    %9 = arith.maximumf %8, %7 : vector<512x128xf32>
    %10 = vector.broadcast %cst_7 : f32 to vector<512x128xf32>
    %11 = arith.minimumf %10, %9 : vector<512x128xf32>
    %12 = arith.mulf %5, %11 : vector<512x128xf32>
    %cst_8 = arith.constant 0.166666672 : f32
    %13 = vector.broadcast %cst_8 : f32 to vector<512x128xf32>
    %14 = arith.mulf %12, %13 : vector<512x128xf32>
    %c0_9 = arith.constant 0 : index
    %c0_10 = arith.constant 0 : index
    %15 = vector.load %arg5[%c0_9, %c0_10] : memref<512x128xf32, #tpu.memory_space<vmem>>, vector<512x128xf32>
    tpu.vector_store %arg5[%c0_9, %c0_10], %14 {strides = array<i32>} : memref<512x128xf32, #tpu.memory_space<vmem>>, vector<512x128xf32>,
    return
  }
  func.func @transform_0(%arg0: i32, %arg1: i32) -> (i32, i32) {
    %c0_i32 = arith.constant 0 : i32
    %c0_i32_0 = arith.constant 0 : i32
    return %arg0, %c0_i32 : i32, i32
  }
  func.func @transform_1(%arg0: i32, %arg1: i32) -> (i32, i32) {
    %c0_i32 = arith.constant 0 : i32
    %c0_i32_0 = arith.constant 0 : i32
    return %c0_i32, %arg1 : i32, i32
  }
  func.func @transform_2(%arg0: i32, %arg1: i32) -> (i32, i32) {
    %c0_i32 = arith.constant 0 : i32
    %c0_i32_0 = arith.constant 0 : i32
    return %c0_i32, %arg1 : i32, i32
  }
  func.func @transform_3(%arg0: i32, %arg1: i32) -> (i32, i32) {
    %c0_i32 = arith.constant 0 : i32
    return %arg0, %arg1 : i32, i32
  }
}

</mosaic_0001>

<bundles_post_ra>
// kernel: conv_block_forward.1
= control target key start
LH: loop header
LB: loop body
LE: loop exit
PB: predicated region body
PF: predicated region fallthrough
CT: control target
= control target key end

     0   :  { %vm90_vm0 = vcmask 293888   ;;  %vm283_vm1 = vcmask 1043456   ;;  %s1987_s1 = inlined_call_operand.vmem [shape: f32[36,128], index: 1, kind: input, shape index: {}]   ;;  %s1988_s0 = inlined_call_operand.vmem [shape: f32[512,36], index: 0, kind: input, shape index: {}]   ;;  %s1989_s2 = inlined_call_operand.vmem [shape: f32[1,128], index: 2, kind: input, shape index: {}]   ;;  %s1990_s3 = inlined_call_operand.vmem [shape: f32[512,128], index: 3, kind: output, shape index: {}]  }
   0x1   :  { %v78_v0 = vld [vmem:[%s1987_s1] sm:$0xff]  ;;  %v79_v1 = vld [vmem:[%s1987_s1 + $0x8] sm:$0xff]  ;;  %v80_v2 = vld [vmem:[%s1987_s1 + $0x10] sm:$0xff] }
   0x2   :  { %v1301_v3 = vpack.c.bf16 %v79_v1, %v78_v0  ;;  %v81_v4 = vld [vmem:[%s1987_s1 + $0x18] sm:$0xff]  ;;  %v14_v5 = vld [vmem:[%s1988_s0] sm:$0xff]  ;;  %v15_v9 = vld [vmem:[%s1988_s0 + $0x8] sm:$0xff] }
   0x3   :  { %v1305_v6 = vpack.c.bf16 %v81_v4, %v80_v2  ;;  %1205 = vmatprep.mubr.msk.f32.mxu0 %vm90_vm0, %v14_v5  ;;  %v46_v7 = vld [vmem:[%s1988_s0 + $0x100] sm:$0xff]  ;;  %v47_v10 = vld [vmem:[%s1988_s0 + $0x108] sm:$0xff]  ;;  %v16_v11 = vld [vmem:[%s1988_s0 + $0x10] sm:$0xff] }
   0x4   :  { %1302 = vmatprep.subr.bf16.mxu0 %v1301_v3  ;;  %1309 = vmatprep.subr.bf16.mxu1 %v1301_v3  ;;  %v82_v8 = vld [vmem:[%s1987_s1 + $0x20] sm:$0xf]  ;;  %v48_v12 = vld [vmem:[%s1988_s0 + $0x110] sm:$0xff]  ;;  %v17_v13 = vld [vmem:[%s1988_s0 + $0x18] sm:$0xff] }
   0x5   :  { %1304 = vmatpush3.bf16.msra.mxu0 %v1301_v3  ;;  %1312 = vmatpush3.bf16.msra.mxu1 %v1301_v3  ;;  %v49_v14 = vld [vmem:[%s1988_s0 + $0x118] sm:$0xff]  ;;  %v18_v15 = vld [vmem:[%s1988_s0 + $0x20] sm:$0xff]  ;;  %v19_v17 = vld [vmem:[%s1988_s0 + $0x28] sm:$0xff] }
   0x6   :  { %1306 = vmatprep.subr.bf16.mxu0 %v1305_v6  ;;  %1310 = vmatprep.subr.bf16.mxu1 %v1305_v6  ;;  %v50_v16 = vld [vmem:[%s1988_s0 + $0x120] sm:$0xff]  ;;  %v51_v18 = vld [vmem:[%s1988_s0 + $0x128] sm:$0xff]  ;;  %v20_v19 = vld [vmem:[%s1988_s0 + $0x30] sm:$0xff] }
   0x7   :  { %1253 = vmatprep.mubr.msk.f32.mxu1 %vm90_vm0, %v46_v7  ;;  %v52_v20 = vld [vmem:[%s1988_s0 + $0x130] sm:$0xff]  ;;  %v21_v21 = vld [vmem:[%s1988_s0 + $0x38] sm:$0xff]  ;;  %v22_v23 = vld [vmem:[%s1988_s0 + $0x40] sm:$0xff] }
   0x8   :  { %v53_v22 = vld [vmem:[%s1988_s0 + $0x138] sm:$0xff]  ;;  %v54_v24 = vld [vmem:[%s1988_s0 + $0x140] sm:$0xff]  ;;  %v23_v25 = vld [vmem:[%s1988_s0 + $0x48] sm:$0xff] }
   0x9   :  { %1308 = vmatpush3.bf16.msra.mxu0 %v1305_v6  ;;  %1313 = vmatpush3.bf16.msra.mxu1 %v1305_v6  ;;  %v55_v26 = vld [vmem:[%s1988_s0 + $0x148] sm:$0xff]  ;;  %v24_v27 = vld [vmem:[%s1988_s0 + $0x50] sm:$0xff]  ;;  %v25_v29 = vld [vmem:[%s1988_s0 + $0x58] sm:$0xff] }
   0xa   :  { %1203 = vmatprep.subr.msk.mxu0 %vm283_vm1, %v82_v8  ;;  %1311 = vmatprep.subr.msk.mxu1 %vm283_vm1, %v82_v8  ;;  %v56_v28 = vld [vmem:[%s1988_s0 + $0x150] sm:$0xff]  ;;  %v57_v30 = vld [vmem:[%s1988_s0 + $0x158] sm:$0xff]  ;;  %v26_v31 = vld [vmem:[%s1988_s0 + $0x60] sm:$0xff] }
   0xb   :  { %v58_v32 = vld [vmem:[%s1988_s0 + $0x160] sm:$0xff]  ;;  %v27_v33 = vld [vmem:[%s1988_s0 + $0x68] sm:$0xff]  ;;  %v28_v35 = vld [vmem:[%s1988_s0 + $0x70] sm:$0xff] }
   0xc   :  { %v59_v34 = vld [vmem:[%s1988_s0 + $0x168] sm:$0xff]  ;;  %v60_v36 = vld [vmem:[%s1988_s0 + $0x170] sm:$0xff]  ;;  %v29_v37 = vld [vmem:[%s1988_s0 + $0x78] sm:$0xff] }
   0xd   :  { %1204 = vmatpush3.msk.msra.mxu0 %vm283_vm1, %v82_v8  ;;  %1314 = vmatpush3.msk.msra.mxu1 %vm283_vm1, %v82_v8  ;;  %v61_v38 = vld [vmem:[%s1988_s0 + $0x178] sm:$0xff]  ;;  %v30_v39 = vld [vmem:[%s1988_s0 + $0x80] sm:$0xff]  ;;  %v31_v41 = vld [vmem:[%s1988_s0 + $0x88] sm:$0xff] }
   0xe   :  { %1206 = vmatmul.mubr.msk.f32.vlgmr.msra.gmra.mrb[0].mxu0 %vm90_vm0, %v15_v9  ;;  %1254 = vmatmul.mubr.msk.f32.vlgmr.msra.gmra.mrb[0].mxu1 %vm90_vm0, %v47_v10  ;;  %v62_v40 = vld [vmem:[%s1988_s0 + $0x180] sm:$0xff]  ;;  %v63_v42 = vld [vmem:[%s1988_s0 + $0x188] sm:$0xff]  ;;  %v32_v43 = vld [vmem:[%s1988_s0 + $0x90] sm:$0xff] }
   0xf   :  { %1208 = vmatprep.mubr.msk.f32.mxu0 %vm90_vm0, %v16_v11  ;;  %1256 = vmatprep.mubr.msk.f32.mxu1 %vm90_vm0, %v48_v12  ;;  %v64_v44 = vld [vmem:[%s1988_s0 + $0x190] sm:$0xff]  ;;  %v33_v45 = vld [vmem:[%s1988_s0 + $0x98] sm:$0xff]  ;;  %v34_v47 = vld [vmem:[%s1988_s0 + $0xa0] sm:$0xff] }
  0x10   :  { %v65_v46 = vld [vmem:[%s1988_s0 + $0x198] sm:$0xff]  ;;  %v66_v48 = vld [vmem:[%s1988_s0 + $0x1a0] sm:$0xff]  ;;  %v35_v49 = vld [vmem:[%s1988_s0 + $0xa8] sm:$0xff] }
  0x11   :  { %v67_v50 = vld [vmem:[%s1988_s0 + $0x1a8] sm:$0xff]  ;;  %v36_v51 = vld [vmem:[%s1988_s0 + $0xb0] sm:$0xff]  ;;  %v37_v53 = vld [vmem:[%s1988_s0 + $0xb8] sm:$0xff] }
  0x12   :  { %1209 = vmatmul.mubr.msk.f32.gmra.mrb[2].mxu0 %vm90_vm0, %v17_v13  ;;  %1257 = vmatmul.mubr.msk.f32.gmra.mrb[2].mxu1 %vm90_vm0, %v49_v14  ;;  %v68_v52 = vld [vmem:[%s1988_s0 + $0x1b0] sm:$0xff]  ;;  %v69_v54 = vld [vmem:[%s1988_s0 + $0x1b8] sm:$0xff]  ;;  %v38_v55 = vld [vmem:[%s1988_s0 + $0xc0] sm:$0xff] }
  0x13   :  { %1211 = vmatprep.mubr.msk.f32.mxu0 %vm90_vm0, %v18_v15  ;;  %1259 = vmatprep.mubr.msk.f32.mxu1 %vm90_vm0, %v50_v16  ;;  %v70_v56 = vld [vmem:[%s1988_s0 + $0x1c0] sm:$0xff]  ;;  %v39_v57 = vld [vmem:[%s1988_s0 + $0xc8] sm:$0xff]  ;;  %v40_v59 = vld [vmem:[%s1988_s0 + $0xd0] sm:$0xff] }
  0x14   :  { %v71_v58 = vld [vmem:[%s1988_s0 + $0x1c8] sm:$0xff]  ;;  %v72_v60 = vld [vmem:[%s1988_s0 + $0x1d0] sm:$0xff]  ;;  %v41_v61 = vld [vmem:[%s1988_s0 + $0xd8] sm:$0xff] }
  0x15   :  { %v73_v62 = vld [vmem:[%s1988_s0 + $0x1d8] sm:$0xff]  ;;  %v42_v63 = vld [vmem:[%s1988_s0 + $0xe0] sm:$0xff]  ;;  %v43_v1 = vld [vmem:[%s1988_s0 + $0xe8] sm:$0xff] }
  0x16   :  { %1212 = vmatmul.mubr.msk.f32.gmra.mrb[4].mxu0 %vm90_vm0, %v19_v17  ;;  %1260 = vmatmul.mubr.msk.f32.gmra.mrb[4].mxu1 %vm90_vm0, %v51_v18  ;;  %v74_v0 = vld [vmem:[%s1988_s0 + $0x1e0] sm:$0xff]  ;;  %v75_v2 = vld [vmem:[%s1988_s0 + $0x1e8] sm:$0xff]  ;;  %v44_v3 = vld [vmem:[%s1988_s0 + $0xf0] sm:$0xff] }
  0x17   :  { %1214 = vmatprep.mubr.msk.f32.mxu0 %vm90_vm0, %v20_v19  ;;  %1262 = vmatprep.mubr.msk.f32.mxu1 %vm90_vm0, %v52_v20  ;;  %v76_v4 = vld [vmem:[%s1988_s0 + $0x1f0] sm:$0xff]  ;;  %v45_v5 = vld [vmem:[%s1988_s0 + $0xf8] sm:$0xff]  ;;  %v1609_v7 = vld [vmem:[%s1989_s2] ss:$0 sm:$0xff] }
  0x18   :  { %v77_v6 = vld [vmem:[%s1988_s0 + $0x1f8] sm:$0xff] }
  0x1a   :  { %1215 = vmatmul.mubr.msk.f32.gmra.mrb[6].mxu0 %vm90_vm0, %v21_v21  ;;  %1263 = vmatmul.mubr.msk.f32.gmra.mrb[6].mxu1 %vm90_vm0, %v53_v22 }
  0x1b   :  { %1217 = vmatprep.mubr.msk.f32.mxu0 %vm90_vm0, %v22_v23  ;;  %1265 = vmatprep.mubr.msk.f32.mxu1 %vm90_vm0, %v54_v24 }
  0x1e   :  { %1218 = vmatmul.mubr.msk.f32.gmra.mrb[8].mxu0 %vm90_vm0, %v23_v25  ;;  %1266 = vmatmul.mubr.msk.f32.gmra.mrb[8].mxu1 %vm90_vm0, %v55_v26 }
  0x1f   :  { %1220 = vmatprep.mubr.msk.f32.mxu0 %vm90_vm0, %v24_v27  ;;  %1268 = vmatprep.mubr.msk.f32.mxu1 %vm90_vm0, %v56_v28 }
  0x22   :  { %1221 = vmatmul.mubr.msk.f32.gmra.mrb[10].mxu0 %vm90_vm0, %v25_v29  ;;  %1269 = vmatmul.mubr.msk.f32.gmra.mrb[10].mxu1 %vm90_vm0, %v57_v30 }
  0x23   :  { %1223 = vmatprep.mubr.msk.f32.mxu0 %vm90_vm0, %v26_v31  ;;  %1271 = vmatprep.mubr.msk.f32.mxu1 %vm90_vm0, %v58_v32 }
  0x26   :  { %1224 = vmatmul.mubr.msk.f32.gmra.mrb[12].mxu0 %vm90_vm0, %v27_v33  ;;  %1272 = vmatmul.mubr.msk.f32.gmra.mrb[12].mxu1 %vm90_vm0, %v59_v34 }
  0x27   :  { %1226 = vmatprep.mubr.msk.f32.mxu0 %vm90_vm0, %v28_v35  ;;  %1274 = vmatprep.mubr.msk.f32.mxu1 %vm90_vm0, %v60_v36 }
  0x2a   :  { %1227 = vmatmul.mubr.msk.f32.gmra.mrb[14].mxu0 %vm90_vm0, %v29_v37  ;;  %1275 = vmatmul.mubr.msk.f32.gmra.mrb[14].mxu1 %vm90_vm0, %v61_v38 }
  0x2b   :  { %1229 = vmatprep.mubr.msk.f32.mxu0 %vm90_vm0, %v30_v39  ;;  %1277 = vmatprep.mubr.msk.f32.mxu1 %vm90_vm0, %v62_v40 }
  0x2e   :  { %1230 = vmatmul.mubr.msk.f32.gmra.mrb[16].mxu0 %vm90_vm0, %v31_v41  ;;  %1278 = vmatmul.mubr.msk.f32.gmra.mrb[16].mxu1 %vm90_vm0, %v63_v42 }
  0x2f   :  { %1232 = vmatprep.mubr.msk.f32.mxu0 %vm90_vm0, %v32_v43  ;;  %1280 = vmatprep.mubr.msk.f32.mxu1 %vm90_vm0, %v64_v44 }
  0x32   :  { %1233 = vmatmul.mubr.msk.f32.gmra.mrb[18].mxu0 %vm90_vm0, %v33_v45  ;;  %1281 = vmatmul.mubr.msk.f32.gmra.mrb[18].mxu1 %vm90_vm0, %v65_v46 }
  0x33   :  { %1235 = vmatprep.mubr.msk.f32.mxu0 %vm90_vm0, %v34_v47  ;;  %1283 = vmatprep.mubr.msk.f32.mxu1 %vm90_vm0, %v66_v48 }
  0x36   :  { %1236 = vmatmul.mubr.msk.f32.gmra.mrb[20].mxu0 %vm90_vm0, %v35_v49  ;;  %1284 = vmatmul.mubr.msk.f32.gmra.mrb[20].mxu1 %vm90_vm0, %v67_v50 }
  0x37   :  { %1238 = vmatprep.mubr.msk.f32.mxu0 %vm90_vm0, %v36_v51  ;;  %1286 = vmatprep.mubr.msk.f32.mxu1 %vm90_vm0, %v68_v52 }
  0x3a   :  { %1239 = vmatmul.mubr.msk.f32.gmra.mrb[22].mxu0 %vm90_vm0, %v37_v53  ;;  %1287 = vmatmul.mubr.msk.f32.gmra.mrb[22].mxu1 %vm90_vm0, %v69_v54 }
  0x3b   :  { %1241 = vmatprep.mubr.msk.f32.mxu0 %vm90_vm0, %v38_v55  ;;  %1289 = vmatprep.mubr.msk.f32.mxu1 %vm90_vm0, %v70_v56 }
  0x3e   :  { %1242 = vmatmul.mubr.msk.f32.gmra.mrb[24].mxu0 %vm90_vm0, %v39_v57  ;;  %1290 = vmatmul.mubr.msk.f32.gmra.mrb[24].mxu1 %vm90_vm0, %v71_v58 }
  0x3f   :  { %1244 = vmatprep.mubr.msk.f32.mxu0 %vm90_vm0, %v40_v59  ;;  %1292 = vmatprep.mubr.msk.f32.mxu1 %vm90_vm0, %v72_v60 }
  0x42   :  { %1245 = vmatmul.mubr.msk.f32.gmra.mrb[26].mxu0 %vm90_vm0, %v41_v61  ;;  %1293 = vmatmul.mubr.msk.f32.gmra.mrb[26].mxu1 %vm90_vm0, %v73_v62 }
  0x43   :  { %1247 = vmatprep.mubr.msk.f32.mxu0 %vm90_vm0, %v42_v63  ;;  %1295 = vmatprep.mubr.msk.f32.mxu1 %vm90_vm0, %v74_v0 }
  0x46   :  { %1248 = vmatmul.mubr.msk.f32.gmra.mrb[28].mxu0 %vm90_vm0, %v43_v1  ;;  %1296 = vmatmul.mubr.msk.f32.gmra.mrb[28].mxu1 %vm90_vm0, %v75_v2 }
  0x47   :  { %1250 = vmatprep.mubr.msk.f32.mxu0 %vm90_vm0, %v44_v3  ;;  %1298 = vmatprep.mubr.msk.f32.mxu1 %vm90_vm0, %v76_v4 }
  0x4a   :  { %1251 = vmatmul.mubr.msk.f32.gmra.mrb[30].mxu0 %vm90_vm0, %v45_v5  ;;  %1299 = vmatmul.mubr.msk.f32.gmra.mrb[30].mxu1 %vm90_vm0, %v77_v6 }
  0xe1   :  { %v1207_v8 = vpop.f32.mrb[0].mxu0  ;;  %v1255_v9 = vpop.f32.mrb[0].mxu1 }
  0xe2   :  { %v359_v10 = vadd.f32 %v1207_v8, %v1609_v7  ;;  %v519_v11 = vadd.f32 %v1255_v9, %v1609_v7  ;;  %v353_v12 = vpop.f32.mrb[1].mxu0  ;;  %v513_v13 = vpop.f32.mrb[1].mxu1 }
  0xe3   :  { %v354_v14 = vadd.f32 %v1609_v7, %v353_v12  ;;  %v514_v15 = vadd.f32 %v1609_v7, %v513_v13 }
  0xe4   :  { %v673_v16 = vadd.f32 3.0, %v359_v10  ;;  %v705_v17 = vadd.f32 3.0, %v519_v11 }
  0xe5   :  { %v672_v18 = vadd.f32 3.0, %v354_v14  ;;  %v704_v19 = vadd.f32 3.0, %v514_v15  ;;  %v1210_v20 = vpop.f32.mrb[2].mxu0  ;;  %v1258_v21 = vpop.f32.mrb[2].mxu1 }
  0xe6   :  { %v737_v22 = vmax.f32 %v673_v16, 0.0  ;;  %v769_v23 = vmax.f32 %v705_v17, 0.0  ;;  %v369_v24 = vadd.f32 %v1210_v20, %v1609_v7  ;;  %v529_v25 = vadd.f32 %v1258_v21, %v1609_v7  ;;  %v363_v26 = vpop.f32.mrb[3].mxu0  ;;  %v523_v27 = vpop.f32.mrb[3].mxu1 }
  0xe7   :  { %v736_v28 = vmax.f32 %v672_v18, 0.0  ;;  %v768_v29 = vmax.f32 %v704_v19, 0.0  ;;  %v364_v30 = vadd.f32 %v1609_v7, %v363_v26  ;;  %v524_v31 = vadd.f32 %v1609_v7, %v523_v27 }
  0xe8   :  { %v801_v32 = vmin.f32 %v737_v22, 6.0  ;;  %v833_v33 = vmin.f32 %v769_v23, 6.0  ;;  %v675_v34 = vadd.f32 3.0, %v369_v24  ;;  %v707_v35 = vadd.f32 3.0, %v529_v25 }
  0xe9   :  { %v800_v36 = vmin.f32 %v736_v28, 6.0  ;;  %v832_v37 = vmin.f32 %v768_v29, 6.0  ;;  %v674_v38 = vadd.f32 3.0, %v364_v30  ;;  %v706_v39 = vadd.f32 3.0, %v524_v31  ;;  %v1213_v40 = vpop.f32.mrb[4].mxu0  ;;  %v1261_v41 = vpop.f32.mrb[4].mxu1 }
  0xea   :  { %v865_v42 = vmul.f32 %v801_v32, %v359_v10  ;;  %v897_v43 = vmul.f32 %v833_v33, %v519_v11  ;;  %v739_v44 = vmax.f32 %v675_v34, 0.0  ;;  %v771_v45 = vmax.f32 %v707_v35, 0.0  ;;  %v373_v46 = vpop.f32.mrb[5].mxu0  ;;  %v533_v47 = vpop.f32.mrb[5].mxu1 }
  0xeb   :  { %v864_v48 = vmul.f32 %v800_v36, %v354_v14  ;;  %v896_v49 = vmul.f32 %v832_v37, %v514_v15  ;;  %v738_v50 = vmax.f32 %v674_v38, 0.0  ;;  %v770_v51 = vmax.f32 %v706_v39, 0.0 }
  0xec   :  { %v929_v52 = vmul.f32 0.16666667, %v865_v42  ;;  %v961_v53 = vmul.f32 0.16666667, %v897_v43  ;;  %v803_v54 = vmin.f32 %v739_v44, 6.0  ;;  %v835_v55 = vmin.f32 %v771_v45, 6.0 }
  0xed   :  { %v928_v56 = vmul.f32 0.16666667, %v864_v48  ;;  %v960_v57 = vmul.f32 0.16666667, %v896_v49  ;;  %v802_v58 = vmin.f32 %v738_v50, 6.0  ;;  %v834_v59 = vmin.f32 %v770_v51, 6.0 }
  0xee   :  { %993 = vst [vmem:[%s1990_s3 + $0x8] sm:$0xff] %v929_v52  ;;  %1025 = vst [vmem:[%s1990_s3 + $0x108] sm:$0xff] %v961_v53  ;;  %v867_v60 = vmul.f32 %v803_v54, %v369_v24  ;;  %v899_v61 = vmul.f32 %v835_v55, %v529_v25  ;;  %v379_v62 = vadd.f32 %v1213_v40, %v1609_v7  ;;  %v1216_v0 = vpop.f32.mrb[6].mxu0  ;;  %v1264_v1 = vpop.f32.mrb[6].mxu1 }
  0xef   :  { %v539_v63 = vadd.f32 %v1261_v41, %v1609_v7  ;;  %992 = vst [vmem:[%s1990_s3] sm:$0xff] %v928_v56  ;;  %1024 = vst [vmem:[%s1990_s3 + $0x100] sm:$0xff] %v960_v57  ;;  %v866_v2 = vmul.f32 %v802_v58, %v364_v30  ;;  %v898_v3 = vmul.f32 %v834_v59, %v524_v31  ;;  %v383_v6 = vpop.f32.mrb[7].mxu0  ;;  %v543_v8 = vpop.f32.mrb[7].mxu1 }
  0xf0   :  { %v374_v4 = vadd.f32 %v1609_v7, %v373_v46  ;;  %v534_v5 = vadd.f32 %v1609_v7, %v533_v47  ;;  %v931_v9 = vmul.f32 0.16666667, %v867_v60  ;;  %v963_v10 = vmul.f32 0.16666667, %v899_v61 }
  0xf1   :  { %v677_v11 = vadd.f32 3.0, %v379_v62  ;;  %v709_v12 = vadd.f32 3.0, %v539_v63  ;;  %v930_v13 = vmul.f32 0.16666667, %v866_v2  ;;  %v962_v14 = vmul.f32 0.16666667, %v898_v3 }
  0xf2   :  { %v676_v15 = vadd.f32 3.0, %v374_v4  ;;  %v708_v16 = vadd.f32 3.0, %v534_v5  ;;  %995 = vst [vmem:[%s1990_s3 + $0x18] sm:$0xff] %v931_v9  ;;  %1027 = vst [vmem:[%s1990_s3 + $0x118] sm:$0xff] %v963_v10  ;;  %v389_v19 = vadd.f32 %v1216_v0, %v1609_v7  ;;  %v549_v20 = vadd.f32 %v1264_v1, %v1609_v7  ;;  %v1219_v21 = vpop.f32.mrb[8].mxu0  ;;  %v1267_v22 = vpop.f32.mrb[8].mxu1 }
  0xf3   :  { %v741_v17 = vmax.f32 %v677_v11, 0.0  ;;  %v773_v18 = vmax.f32 %v709_v12, 0.0  ;;  %994 = vst [vmem:[%s1990_s3 + $0x10] sm:$0xff] %v930_v13  ;;  %1026 = vst [vmem:[%s1990_s3 + $0x110] sm:$0xff] %v962_v14  ;;  %v384_v25 = vadd.f32 %v1609_v7, %v383_v6  ;;  %v544_v26 = vadd.f32 %v1609_v7, %v543_v8  ;;  %v393_v27 = vpop.f32.mrb[9].mxu0  ;;  %v553_v28 = vpop.f32.mrb[9].mxu1 }
  0xf4   :  { %v740_v23 = vmax.f32 %v676_v15, 0.0  ;;  %v772_v24 = vmax.f32 %v708_v16, 0.0  ;;  %v679_v31 = vadd.f32 3.0, %v389_v19  ;;  %v711_v32 = vadd.f32 3.0, %v549_v20 }
  0xf5   :  { %v805_v29 = vmin.f32 %v741_v17, 6.0  ;;  %v837_v30 = vmin.f32 %v773_v18, 6.0  ;;  %v678_v35 = vadd.f32 3.0, %v384_v25  ;;  %v710_v36 = vadd.f32 3.0, %v544_v26  ;;  %v1222_v37 = vpop.f32.mrb[10].mxu0  ;;  %v1270_v38 = vpop.f32.mrb[10].mxu1 }
  0xf6   :  { %v804_v33 = vmin.f32 %v740_v23, 6.0  ;;  %v836_v34 = vmin.f32 %v772_v24, 6.0  ;;  %v743_v41 = vmax.f32 %v679_v31, 0.0  ;;  %v775_v42 = vmax.f32 %v711_v32, 0.0  ;;  %v403_v43 = vpop.f32.mrb[11].mxu0  ;;  %v563_v44 = vpop.f32.mrb[11].mxu1 }
  0xf7   :  { %v869_v39 = vmul.f32 %v805_v29, %v379_v62  ;;  %v901_v40 = vmul.f32 %v837_v30, %v539_v63  ;;  %v742_v47 = vmax.f32 %v678_v35, 0.0  ;;  %v774_v48 = vmax.f32 %v710_v36, 0.0 }
  0xf8   :  { %v868_v45 = vmul.f32 %v804_v33, %v374_v4  ;;  %v900_v46 = vmul.f32 %v836_v34, %v534_v5  ;;  %v807_v51 = vmin.f32 %v743_v41, 6.0  ;;  %v839_v52 = vmin.f32 %v775_v42, 6.0 }
  0xf9   :  { %v933_v49 = vmul.f32 0.16666667, %v869_v39  ;;  %v965_v50 = vmul.f32 0.16666667, %v901_v40  ;;  %v806_v55 = vmin.f32 %v742_v47, 6.0  ;;  %v838_v56 = vmin.f32 %v774_v48, 6.0 }
  0xfa   :  { %v932_v53 = vmul.f32 0.16666667, %v868_v45  ;;  %v964_v54 = vmul.f32 0.16666667, %v900_v46  ;;  %v871_v57 = vmul.f32 %v807_v51, %v389_v19  ;;  %v903_v58 = vmul.f32 %v839_v52, %v549_v20  ;;  %v1659_v61 = vpop.f32.mrb[12].mxu0  ;;  %v1661_v62 = vpop.f32.mrb[12].mxu1 }
  0xfb   :  { %997 = vst [vmem:[%s1990_s3 + $0x28] sm:$0xff] %v933_v49  ;;  %1029 = vst [vmem:[%s1990_s3 + $0x128] sm:$0xff] %v965_v50  ;;  %v399_v59 = vadd.f32 %v1219_v21, %v1609_v7  ;;  %v559_v60 = vadd.f32 %v1267_v22, %v1609_v7  ;;  %v870_v63 = vmul.f32 %v806_v55, %v384_v25  ;;  %v1671_v3 = vpop.f32.mrb[13].mxu0  ;;  %v1673_v4 = vpop.f32.mrb[13].mxu1 }
  0xfc   :  { %996 = vst [vmem:[%s1990_s3 + $0x20] sm:$0xff] %v932_v53  ;;  %1028 = vst [vmem:[%s1990_s3 + $0x120] sm:$0xff] %v964_v54  ;;  %v902_v0 = vmul.f32 %v838_v56, %v544_v26  ;;  %v394_v1 = vadd.f32 %v1609_v7, %v393_v27  ;;  %v554_v2 = vadd.f32 %v1609_v7, %v553_v28  ;;  %v935_v5 = vmul.f32 0.16666667, %v871_v57 }
  0xfd   :  { %v967_v6 = vmul.f32 0.16666667, %v903_v58  ;;  %v681_v8 = vadd.f32 3.0, %v399_v59  ;;  %v713_v9 = vadd.f32 3.0, %v559_v60  ;;  %v934_v10 = vmul.f32 0.16666667, %v870_v63 }
  0xfe   :  { %v966_v11 = vmul.f32 0.16666667, %v902_v0  ;;  %v680_v12 = vadd.f32 3.0, %v394_v1  ;;  %v712_v13 = vadd.f32 3.0, %v554_v2  ;;  %999 = vst [vmem:[%s1990_s3 + $0x38] sm:$0xff] %v935_v5  ;;  %v409_v16 = vadd.f32 %v1222_v37, %v1609_v7  ;;  %v1683_v18 = vpop.f32.mrb[14].mxu0 }
  0xff   :  { %1031 = vst [vmem:[%s1990_s3 + $0x138] sm:$0xff] %v967_v6  ;;  %v745_v14 = vmax.f32 %v681_v8, 0.0  ;;  %v777_v15 = vmax.f32 %v713_v9, 0.0  ;;  %v569_v17 = vadd.f32 %v1270_v38, %v1609_v7  ;;  %v1685_v19 = vpop.f32.mrb[14].mxu1  ;;  %998 = vst [vmem:[%s1990_s3 + $0x30] sm:$0xff] %v934_v10  ;;  %v404_v22 = vadd.f32 %v1609_v7, %v403_v43  ;;  %v1695_v24 = vpop.f32.mrb[15].mxu0 }
 0x100   :  { %1030 = vst [vmem:[%s1990_s3 + $0x130] sm:$0xff] %v966_v11  ;;  %v744_v20 = vmax.f32 %v680_v12, 0.0  ;;  %v776_v21 = vmax.f32 %v712_v13, 0.0  ;;  %v564_v23 = vadd.f32 %v1609_v7, %v563_v44  ;;  %v1697_v25 = vpop.f32.mrb[15].mxu1  ;;  %v683_v28 = vadd.f32 3.0, %v409_v16 }
 0x101   :  { %v809_v26 = vmin.f32 %v745_v14, 6.0  ;;  %v841_v27 = vmin.f32 %v777_v15, 6.0  ;;  %v715_v29 = vadd.f32 3.0, %v569_v17  ;;  %v682_v32 = vadd.f32 3.0, %v404_v22  ;;  %v1699_v34 = vpop.f32.mrb[16].mxu0  ;;  %v1701_v35 = vpop.f32.mrb[16].mxu1 }
 0x102   :  { %v808_v30 = vmin.f32 %v744_v20, 6.0  ;;  %v840_v31 = vmin.f32 %v776_v21, 6.0  ;;  %v714_v33 = vadd.f32 3.0, %v564_v23  ;;  %v747_v38 = vmax.f32 %v683_v28, 0.0  ;;  %v1703_v40 = vpop.f32.mrb[17].mxu0  ;;  %v1705_v41 = vpop.f32.mrb[17].mxu1 }
 0x103   :  { %v873_v36 = vmul.f32 %v809_v26, %v399_v59  ;;  %v905_v37 = vmul.f32 %v841_v27, %v559_v60  ;;  %v779_v39 = vmax.f32 %v715_v29, 0.0  ;;  %v746_v44 = vmax.f32 %v682_v32, 0.0 }
 0x104   :  { %v872_v42 = vmul.f32 %v808_v30, %v394_v1  ;;  %v904_v43 = vmul.f32 %v840_v31, %v554_v2  ;;  %v778_v45 = vmax.f32 %v714_v33, 0.0  ;;  %v811_v48 = vmin.f32 %v747_v38, 6.0 }
 0x105   :  { %v937_v46 = vmul.f32 0.16666667, %v873_v36  ;;  %v969_v47 = vmul.f32 0.16666667, %v905_v37  ;;  %v843_v49 = vmin.f32 %v779_v39, 6.0  ;;  %v810_v52 = vmin.f32 %v746_v44, 6.0 }
 0x106   :  { %v936_v50 = vmul.f32 0.16666667, %v872_v42  ;;  %v968_v51 = vmul.f32 0.16666667, %v904_v43  ;;  %v842_v53 = vmin.f32 %v778_v45, 6.0  ;;  %v875_v54 = vmul.f32 %v811_v48, %v409_v16  ;;  %v1717_v58 = vpop.f32.mrb[18].mxu0 }
 0x107   :  { %1001 = vst [vmem:[%s1990_s3 + $0x48] sm:$0xff] %v937_v46  ;;  %1033 = vst [vmem:[%s1990_s3 + $0x148] sm:$0xff] %v969_v47  ;;  %v907_v55 = vmul.f32 %v843_v49, %v569_v17  ;;  %v419_v56 = vadd.f32 %v1659_v61, %v1609_v7  ;;  %v579_v57 = vadd.f32 %v1661_v62, %v1609_v7  ;;  %v1719_v59 = vpop.f32.mrb[18].mxu1  ;;  %v1731_v0 = vpop.f32.mrb[19].mxu0 }
 0x108   :  { %1000 = vst [vmem:[%s1990_s3 + $0x40] sm:$0xff] %v936_v50  ;;  %1032 = vst [vmem:[%s1990_s3 + $0x140] sm:$0xff] %v968_v51  ;;  %v874_v60 = vmul.f32 %v810_v52, %v404_v22  ;;  %v906_v63 = vmul.f32 %v842_v53, %v564_v23  ;;  %v414_v61 = vadd.f32 %v1609_v7, %v1671_v3  ;;  %v1733_v1 = vpop.f32.mrb[19].mxu1  ;;  %v939_v2 = vmul.f32 0.16666667, %v875_v54 }
 0x109   :  { %v574_v62 = vadd.f32 %v1609_v7, %v1673_v4  ;;  %v971_v5 = vmul.f32 0.16666667, %v907_v55  ;;  %v685_v6 = vadd.f32 3.0, %v419_v56  ;;  %v717_v8 = vadd.f32 3.0, %v579_v57  ;;  %v1745_v15 = vpop.f32.mrb[20].mxu0  ;;  %v1747_v16 = vpop.f32.mrb[20].mxu1 }
 0x10a   :  { %v938_v9 = vmul.f32 0.16666667, %v874_v60  ;;  %v970_v10 = vmul.f32 0.16666667, %v906_v63  ;;  %v684_v11 = vadd.f32 3.0, %v414_v61  ;;  %1003 = vst [vmem:[%s1990_s3 + $0x58] sm:$0xff] %v939_v2  ;;  %v429_v13 = vadd.f32 %v1683_v18, %v1609_v7 }
 0x10b   :  { %v716_v12 = vadd.f32 3.0, %v574_v62  ;;  %1035 = vst [vmem:[%s1990_s3 + $0x158] sm:$0xff] %v971_v5  ;;  %v749_v3 = vmax.f32 %v685_v6, 0.0  ;;  %v781_v4 = vmax.f32 %v717_v8, 0.0  ;;  %v589_v14 = vadd.f32 %v1685_v19, %v1609_v7  ;;  %v1759_v21 = vpop.f32.mrb[21].mxu0  ;;  %v1761_v22 = vpop.f32.mrb[21].mxu1 }
 0x10c   :  { %1002 = vst [vmem:[%s1990_s3 + $0x50] sm:$0xff] %v938_v9  ;;  %1034 = vst [vmem:[%s1990_s3 + $0x150] sm:$0xff] %v970_v10  ;;  %v748_v17 = vmax.f32 %v684_v11, 0.0  ;;  %v424_v18 = vadd.f32 %v1609_v7, %v1695_v24  ;;  %v584_v19 = vadd.f32 %v1609_v7, %v1697_v25  ;;  %v687_v27 = vadd.f32 3.0, %v429_v13 }
 0x10d   :  { %v780_v20 = vmax.f32 %v716_v12, 0.0  ;;  %v813_v23 = vmin.f32 %v749_v3, 6.0  ;;  %v845_v26 = vmin.f32 %v781_v4, 6.0  ;;  %v719_v28 = vadd.f32 3.0, %v589_v14  ;;  %v1763_v33 = vpop.f32.mrb[22].mxu0  ;;  %v1765_v36 = vpop.f32.mrb[22].mxu1 }
 0x10e   :  { %v812_v29 = vmin.f32 %v748_v17, 6.0  ;;  %v686_v31 = vadd.f32 3.0, %v424_v18  ;;  %v718_v32 = vadd.f32 3.0, %v584_v19  ;;  %v751_v38 = vmax.f32 %v687_v27, 0.0  ;;  %v1767_v39 = vpop.f32.mrb[23].mxu0  ;;  %v1769_v42 = vpop.f32.mrb[23].mxu1 }
 0x10f   :  { %v844_v30 = vmin.f32 %v780_v20, 6.0  ;;  %v877_v24 = vmul.f32 %v813_v23, %v419_v56  ;;  %v909_v37 = vmul.f32 %v845_v26, %v579_v57  ;;  %v783_v25 = vmax.f32 %v719_v28, 0.0 }
 0x110   :  { %v876_v43 = vmul.f32 %v812_v29, %v414_v61  ;;  %v750_v45 = vmax.f32 %v686_v31, 0.0  ;;  %v782_v46 = vmax.f32 %v718_v32, 0.0  ;;  %v815_v49 = vmin.f32 %v751_v38, 6.0 }
 0x111   :  { %v908_v44 = vmul.f32 %v844_v30, %v574_v62  ;;  %v941_v47 = vmul.f32 0.16666667, %v877_v24  ;;  %v973_v48 = vmul.f32 0.16666667, %v909_v37  ;;  %v847_v50 = vmin.f32 %v783_v25, 6.0  ;;  %v1781_v63 = vpop.f32.mrb[24].mxu0 }
 0x112   :  { %v940_v51 = vmul.f32 0.16666667, %v876_v43  ;;  %v814_v53 = vmin.f32 %v750_v45, 6.0  ;;  %v846_v54 = vmin.f32 %v782_v46, 6.0  ;;  %v879_v55 = vmul.f32 %v815_v49, %v429_v13  ;;  %v1783_v61 = vpop.f32.mrb[24].mxu1  ;;  %v1795_v5 = vpop.f32.mrb[25].mxu0 }
 0x113   :  { %v972_v52 = vmul.f32 0.16666667, %v908_v44  ;;  %1005 = vst [vmem:[%s1990_s3 + $0x68] sm:$0xff] %v941_v47  ;;  %1037 = vst [vmem:[%s1990_s3 + $0x168] sm:$0xff] %v973_v48  ;;  %v911_v56 = vmul.f32 %v847_v50, %v589_v14  ;;  %v439_v57 = vadd.f32 %v1699_v34, %v1609_v7  ;;  %v599_v60 = vadd.f32 %v1701_v35, %v1609_v7  ;;  %v1797_v6 = vpop.f32.mrb[25].mxu1 }
 0x114   :  { %1004 = vst [vmem:[%s1990_s3 + $0x60] sm:$0xff] %v940_v51  ;;  %v878_v62 = vmul.f32 %v814_v53, %v424_v18  ;;  %v910_v2 = vmul.f32 %v846_v54, %v584_v19  ;;  %v434_v34 = vadd.f32 %v1609_v7, %v1703_v40  ;;  %v594_v35 = vadd.f32 %v1609_v7, %v1705_v41 }
 0x115   :  { %1036 = vst [vmem:[%s1990_s3 + $0x160] sm:$0xff] %v972_v52  ;;  %v943_v8 = vmul.f32 0.16666667, %v879_v55  ;;  %v975_v9 = vmul.f32 0.16666667, %v911_v56  ;;  %v689_v10 = vadd.f32 3.0, %v439_v57  ;;  %v449_v14 = vadd.f32 %v1717_v58, %v1609_v7 }
 0x116   :  { %v721_v11 = vadd.f32 3.0, %v599_v60  ;;  %v942_v12 = vmul.f32 0.16666667, %v878_v62  ;;  %v974_v3 = vmul.f32 0.16666667, %v910_v2  ;;  %v688_v4 = vadd.f32 3.0, %v434_v34 }
 0x117   :  { %v720_v13 = vadd.f32 3.0, %v594_v35  ;;  %1007 = vst [vmem:[%s1990_s3 + $0x78] sm:$0xff] %v943_v8  ;;  %1039 = vst [vmem:[%s1990_s3 + $0x178] sm:$0xff] %v975_v9  ;;  %v753_v40 = vmax.f32 %v689_v10, 0.0  ;;  %v609_v17 = vadd.f32 %v1719_v59, %v1609_v7  ;;  %v1809_v20 = vpop.f32.mrb[26].mxu0  ;;  %v1811_v18 = vpop.f32.mrb[26].mxu1  ;;  %v444_v58 = vadd.f32 %v1609_v7, %v1731_v0 }
 0x118   :  { %v785_v41 = vmax.f32 %v721_v11, 0.0  ;;  %1006 = vst [vmem:[%s1990_s3 + $0x70] sm:$0xff] %v942_v12  ;;  %1038 = vst [vmem:[%s1990_s3 + $0x170] sm:$0xff] %v974_v3  ;;  %v752_v19 = vmax.f32 %v688_v4, 0.0  ;;  %v604_v59 = vadd.f32 %v1609_v7, %v1733_v1  ;;  %v1823_v26 = vpop.f32.mrb[27].mxu0  ;;  %v1825_v27 = vpop.f32.mrb[27].mxu1 }
 0x119   :  { %v784_v23 = vmax.f32 %v720_v13, 0.0  ;;  %v817_v28 = vmin.f32 %v753_v40, 6.0  ;;  %v691_v30 = vadd.f32 3.0, %v449_v14  ;;  %v723_v31 = vadd.f32 3.0, %v609_v17  ;;  %v1827_v25 = vpop.f32.mrb[28].mxu0  ;;  %v1829_v43 = vpop.f32.mrb[28].mxu1 }
 0x11a   :  { %v849_v29 = vmin.f32 %v785_v41, 6.0  ;;  %v816_v32 = vmin.f32 %v752_v19, 6.0  ;;  %v690_v37 = vadd.f32 3.0, %v444_v58  ;;  %v722_v38 = vadd.f32 3.0, %v604_v59  ;;  %v1831_v46 = vpop.f32.mrb[29].mxu0  ;;  %v1833_v47 = vpop.f32.mrb[29].mxu1 }
 0x11b   :  { %v848_v24 = vmin.f32 %v784_v23, 6.0  ;;  %v881_v0 = vmul.f32 %v817_v28, %v439_v57  ;;  %v755_v45 = vmax.f32 %v691_v30, 0.0  ;;  %v787_v1 = vmax.f32 %v723_v31, 0.0 }
 0x11c   :  { %v913_v44 = vmul.f32 %v849_v29, %v599_v60  ;;  %v880_v48 = vmul.f32 %v816_v32, %v434_v34  ;;  %v754_v50 = vmax.f32 %v690_v37, 0.0  ;;  %v786_v51 = vmax.f32 %v722_v38, 0.0 }
 0x11d   :  { %v912_v49 = vmul.f32 %v848_v24, %v594_v35  ;;  %v945_v52 = vmul.f32 0.16666667, %v881_v0  ;;  %v819_v54 = vmin.f32 %v755_v45, 6.0  ;;  %v851_v55 = vmin.f32 %v787_v1, 6.0  ;;  %v1845_v9 = vpop.f32.mrb[30].mxu0  ;;  %v1847_v10 = vpop.f32.mrb[30].mxu1 }
 0x11e   :  { %v977_v53 = vmul.f32 0.16666667, %v913_v44  ;;  %v944_v56 = vmul.f32 0.16666667, %v880_v48  ;;  %v818_v2 = vmin.f32 %v754_v50, 6.0  ;;  %v850_v8 = vmin.f32 %v786_v51, 6.0 }
 0x11f   :  { %v976_v62 = vmul.f32 0.16666667, %v912_v49  ;;  %1009 = vst [vmem:[%s1990_s3 + $0x88] sm:$0xff] %v945_v52  ;;  %v883_v57 = vmul.f32 %v819_v54, %v449_v14  ;;  %v915_v60 = vmul.f32 %v851_v55, %v609_v17  ;;  %v459_v34 = vadd.f32 %v1745_v15, %v1609_v7  ;;  %v1859_v3 = vpop.f32.mrb[31].mxu0  ;;  %v1861_v4 = vpop.f32.mrb[31].mxu1 }
 0x120   :  { %1041 = vst [vmem:[%s1990_s3 + $0x188] sm:$0xff] %v977_v53  ;;  %v619_v35 = vadd.f32 %v1747_v16, %v1609_v7  ;;  %1008 = vst [vmem:[%s1990_s3 + $0x80] sm:$0xff] %v944_v56  ;;  %v882_v11 = vmul.f32 %v818_v2, %v444_v58  ;;  %v914_v12 = vmul.f32 %v850_v8, %v604_v59 }
 0x121   :  { %1040 = vst [vmem:[%s1990_s3 + $0x180] sm:$0xff] %v976_v62  ;;  %v454_v15 = vadd.f32 %v1609_v7, %v1759_v21  ;;  %v614_v16 = vadd.f32 %v1609_v7, %v1761_v22  ;;  %v947_v13 = vmul.f32 0.16666667, %v883_v57  ;;  %v979_v40 = vmul.f32 0.16666667, %v915_v60 }
 0x122   :  { %v693_v41 = vadd.f32 3.0, %v459_v34  ;;  %v725_v14 = vadd.f32 3.0, %v619_v35  ;;  %v946_v17 = vmul.f32 0.16666667, %v882_v11  ;;  %v978_v19 = vmul.f32 0.16666667, %v914_v12 }
 0x123   :  { %v692_v23 = vadd.f32 3.0, %v454_v15  ;;  %v724_v28 = vadd.f32 3.0, %v614_v16  ;;  %1011 = vst [vmem:[%s1990_s3 + $0x98] sm:$0xff] %v947_v13  ;;  %1043 = vst [vmem:[%s1990_s3 + $0x198] sm:$0xff] %v979_v40  ;;  %v469_v58 = vadd.f32 %v1763_v33, %v1609_v7  ;;  %v629_v59 = vadd.f32 %v1765_v36, %v1609_v7 }
 0x124   :  { %v757_v21 = vmax.f32 %v693_v41, 0.0  ;;  %v789_v22 = vmax.f32 %v725_v14, 0.0  ;;  %1010 = vst [vmem:[%s1990_s3 + $0x90] sm:$0xff] %v946_v17  ;;  %1042 = vst [vmem:[%s1990_s3 + $0x190] sm:$0xff] %v978_v19  ;;  %v464_v31 = vadd.f32 %v1609_v7, %v1767_v39  ;;  %v624_v32 = vadd.f32 %v1609_v7, %v1769_v42 }
 0x125   :  { %v756_v29 = vmax.f32 %v692_v23, 0.0  ;;  %v788_v30 = vmax.f32 %v724_v28, 0.0  ;;  %v695_v37 = vadd.f32 3.0, %v469_v58  ;;  %v727_v36 = vadd.f32 3.0, %v629_v59 }
 0x126   :  { %v821_v33 = vmin.f32 %v757_v21, 6.0  ;;  %v853_v24 = vmin.f32 %v789_v22, 6.0  ;;  %v694_v44 = vadd.f32 3.0, %v464_v31  ;;  %v726_v45 = vadd.f32 3.0, %v624_v32 }
 0x127   :  { %v820_v38 = vmin.f32 %v756_v29, 6.0  ;;  %v852_v0 = vmin.f32 %v788_v30, 6.0  ;;  %v759_v49 = vmax.f32 %v695_v37, 0.0  ;;  %v791_v50 = vmax.f32 %v727_v36, 0.0 }
 0x128   :  { %v885_v1 = vmul.f32 %v821_v33, %v459_v34  ;;  %v917_v48 = vmul.f32 %v853_v24, %v619_v35  ;;  %v758_v53 = vmax.f32 %v694_v44, 0.0  ;;  %v790_v54 = vmax.f32 %v726_v45, 0.0 }
 0x129   :  { %v884_v51 = vmul.f32 %v820_v38, %v454_v15  ;;  %v916_v52 = vmul.f32 %v852_v0, %v614_v16  ;;  %v823_v56 = vmin.f32 %v759_v49, 6.0  ;;  %v855_v42 = vmin.f32 %v791_v50, 6.0 }
 0x12a   :  { %v949_v39 = vmul.f32 0.16666667, %v885_v1  ;;  %v981_v55 = vmul.f32 0.16666667, %v917_v48  ;;  %v822_v8 = vmin.f32 %v758_v53, 6.0  ;;  %v854_v57 = vmin.f32 %v790_v54, 6.0 }
 0x12b   :  { %v948_v62 = vmul.f32 0.16666667, %v884_v51  ;;  %v980_v2 = vmul.f32 0.16666667, %v916_v52  ;;  %v887_v60 = vmul.f32 %v823_v56, %v469_v58  ;;  %v919_v34 = vmul.f32 %v855_v42, %v629_v59 }
 0x12c   :  { %1013 = vst [vmem:[%s1990_s3 + $0xa8] sm:$0xff] %v949_v39  ;;  %1045 = vst [vmem:[%s1990_s3 + $0x1a8] sm:$0xff] %v981_v55  ;;  %v479_v35 = vadd.f32 %v1781_v63, %v1609_v7  ;;  %v639_v11 = vadd.f32 %v1783_v61, %v1609_v7  ;;  %v886_v12 = vmul.f32 %v822_v8, %v464_v31 }
 0x12d   :  { %1012 = vst [vmem:[%s1990_s3 + $0xa0] sm:$0xff] %v948_v62  ;;  %1044 = vst [vmem:[%s1990_s3 + $0x1a0] sm:$0xff] %v980_v2  ;;  %v918_v15 = vmul.f32 %v854_v57, %v624_v32  ;;  %v474_v16 = vadd.f32 %v1609_v7, %v1795_v5  ;;  %v634_v13 = vadd.f32 %v1609_v7, %v1797_v6  ;;  %v951_v63 = vmul.f32 0.16666667, %v887_v60 }
 0x12e   :  { %v983_v40 = vmul.f32 0.16666667, %v919_v34  ;;  %v697_v41 = vadd.f32 3.0, %v479_v35  ;;  %v729_v61 = vadd.f32 3.0, %v639_v11  ;;  %v950_v14 = vmul.f32 0.16666667, %v886_v12 }
 0x12f   :  { %v982_v17 = vmul.f32 0.16666667, %v918_v15  ;;  %v696_v19 = vadd.f32 3.0, %v474_v16  ;;  %v728_v23 = vadd.f32 3.0, %v634_v13  ;;  %1015 = vst [vmem:[%s1990_s3 + $0xb8] sm:$0xff] %v951_v63  ;;  %v489_v6 = vadd.f32 %v1809_v20, %v1609_v7 }
 0x130   :  { %1047 = vst [vmem:[%s1990_s3 + $0x1b8] sm:$0xff] %v983_v40  ;;  %v761_v5 = vmax.f32 %v697_v41, 0.0  ;;  %v793_v28 = vmax.f32 %v729_v61, 0.0  ;;  %v649_v21 = vadd.f32 %v1811_v18, %v1609_v7  ;;  %1014 = vst [vmem:[%s1990_s3 + $0xb0] sm:$0xff] %v950_v14  ;;  %v484_v59 = vadd.f32 %v1609_v7, %v1823_v26 }
 0x131   :  { %1046 = vst [vmem:[%s1990_s3 + $0x1b0] sm:$0xff] %v982_v17  ;;  %v760_v22 = vmax.f32 %v696_v19, 0.0  ;;  %v792_v58 = vmax.f32 %v728_v23, 0.0  ;;  %v644_v29 = vadd.f32 %v1609_v7, %v1825_v27  ;;  %v699_v31 = vadd.f32 3.0, %v489_v6 }
 0x132   :  { %v825_v20 = vmin.f32 %v761_v5, 6.0  ;;  %v857_v30 = vmin.f32 %v793_v28, 6.0  ;;  %v731_v18 = vadd.f32 3.0, %v649_v21  ;;  %v698_v24 = vadd.f32 3.0, %v484_v59 }
 0x133   :  { %v824_v32 = vmin.f32 %v760_v22, 6.0  ;;  %v856_v33 = vmin.f32 %v792_v58, 6.0  ;;  %v730_v37 = vadd.f32 3.0, %v644_v29  ;;  %v763_v0 = vmax.f32 %v699_v31, 0.0 }
 0x134   :  { %v889_v36 = vmul.f32 %v825_v20, %v479_v35  ;;  %v921_v38 = vmul.f32 %v857_v30, %v639_v11  ;;  %v795_v44 = vmax.f32 %v731_v18, 0.0  ;;  %v762_v48 = vmax.f32 %v698_v24, 0.0 }
 0x135   :  { %v888_v45 = vmul.f32 %v824_v32, %v474_v16  ;;  %v920_v1 = vmul.f32 %v856_v33, %v634_v13  ;;  %v794_v49 = vmax.f32 %v730_v37, 0.0  ;;  %v827_v51 = vmin.f32 %v763_v0, 6.0 }
 0x136   :  { %v953_v26 = vmul.f32 0.16666667, %v889_v36  ;;  %v985_v50 = vmul.f32 0.16666667, %v921_v38  ;;  %v859_v27 = vmin.f32 %v795_v44, 6.0  ;;  %v826_v54 = vmin.f32 %v762_v48, 6.0 }
 0x137   :  { %v952_v52 = vmul.f32 0.16666667, %v888_v45  ;;  %v984_v53 = vmul.f32 0.16666667, %v920_v1  ;;  %v858_v39 = vmin.f32 %v794_v49, 6.0  ;;  %v891_v55 = vmul.f32 %v827_v51, %v489_v6 }
 0x138   :  { %1017 = vst [vmem:[%s1990_s3 + $0xc8] sm:$0xff] %v953_v26  ;;  %1049 = vst [vmem:[%s1990_s3 + $0x1c8] sm:$0xff] %v985_v50  ;;  %v923_v56 = vmul.f32 %v859_v27, %v649_v21  ;;  %v499_v42 = vadd.f32 %v1827_v25, %v1609_v7  ;;  %v659_v62 = vadd.f32 %v1829_v43, %v1609_v7 }
 0x139   :  { %1016 = vst [vmem:[%s1990_s3 + $0xc0] sm:$0xff] %v952_v52  ;;  %1048 = vst [vmem:[%s1990_s3 + $0x1c0] sm:$0xff] %v984_v53  ;;  %v890_v2 = vmul.f32 %v826_v54, %v484_v59  ;;  %v922_v8 = vmul.f32 %v858_v39, %v644_v29  ;;  %v494_v57 = vadd.f32 %v1609_v7, %v1831_v46  ;;  %v955_v25 = vmul.f32 0.16666667, %v891_v55 }
 0x13a   :  { %v654_v60 = vadd.f32 %v1609_v7, %v1833_v47  ;;  %v987_v34 = vmul.f32 0.16666667, %v923_v56  ;;  %v701_v35 = vadd.f32 3.0, %v499_v42  ;;  %v733_v43 = vadd.f32 3.0, %v659_v62 }
 0x13b   :  { %v954_v11 = vmul.f32 0.16666667, %v890_v2  ;;  %v986_v12 = vmul.f32 0.16666667, %v922_v8  ;;  %v700_v15 = vadd.f32 3.0, %v494_v57  ;;  %1019 = vst [vmem:[%s1990_s3 + $0xd8] sm:$0xff] %v955_v25  ;;  %v509_v47 = vadd.f32 %v1845_v9, %v1609_v7 }
 0x13c   :  { %v732_v16 = vadd.f32 3.0, %v654_v60  ;;  %1051 = vst [vmem:[%s1990_s3 + $0x1d8] sm:$0xff] %v987_v34  ;;  %v765_v46 = vmax.f32 %v701_v35, 0.0  ;;  %v797_v13 = vmax.f32 %v733_v43, 0.0  ;;  %v669_v63 = vadd.f32 %v1847_v10, %v1609_v7 }
 0x13d   :  { %1018 = vst [vmem:[%s1990_s3 + $0xd0] sm:$0xff] %v954_v11  ;;  %1050 = vst [vmem:[%s1990_s3 + $0x1d0] sm:$0xff] %v986_v12  ;;  %v764_v40 = vmax.f32 %v700_v15, 0.0  ;;  %v504_v61 = vadd.f32 %v1609_v7, %v1859_v3  ;;  %v664_v14 = vadd.f32 %v1609_v7, %v1861_v4  ;;  %v703_v19 = vadd.f32 3.0, %v509_v47 }
 0x13e   :  { %v796_v41 = vmax.f32 %v732_v16, 0.0  ;;  %v829_v9 = vmin.f32 %v765_v46, 6.0  ;;  %v861_v17 = vmin.f32 %v797_v13, 6.0  ;;  %v735_v10 = vadd.f32 3.0, %v669_v63 }
 0x13f   :  { %v828_v23 = vmin.f32 %v764_v40, 6.0  ;;  %v702_v28 = vadd.f32 3.0, %v504_v61  ;;  %v734_v6 = vadd.f32 3.0, %v664_v14  ;;  %v767_v58 = vmax.f32 %v703_v19, 0.0 }
 0x140   :  { %v860_v5 = vmin.f32 %v796_v41, 6.0  ;;  %v893_v21 = vmul.f32 %v829_v9, %v499_v42  ;;  %v925_v22 = vmul.f32 %v861_v17, %v659_v62  ;;  %v799_v59 = vmax.f32 %v735_v10, 0.0 }
 0x141   :  { %v892_v29 = vmul.f32 %v828_v23, %v494_v57  ;;  %v766_v30 = vmax.f32 %v702_v28, 0.0  ;;  %v798_v31 = vmax.f32 %v734_v6, 0.0  ;;  %v831_v32 = vmin.f32 %v767_v58, 6.0 }
 0x142   :  { %v924_v20 = vmul.f32 %v860_v5, %v654_v60  ;;  %v957_v3 = vmul.f32 0.16666667, %v893_v21  ;;  %v989_v18 = vmul.f32 0.16666667, %v925_v22  ;;  %v863_v7 = vmin.f32 %v799_v59, 6.0 }
 0x143   :  { %v956_v4 = vmul.f32 0.16666667, %v892_v29  ;;  %v830_v24 = vmin.f32 %v766_v30, 6.0  ;;  %v862_v37 = vmin.f32 %v798_v31, 6.0  ;;  %v895_v36 = vmul.f32 %v831_v32, %v509_v47 }
 0x144   :  { %v988_v33 = vmul.f32 0.16666667, %v924_v20  ;;  %1021 = vst [vmem:[%s1990_s3 + $0xe8] sm:$0xff] %v957_v3  ;;  %1053 = vst [vmem:[%s1990_s3 + $0x1e8] sm:$0xff] %v989_v18  ;;  %v927_v38 = vmul.f32 %v863_v7, %v669_v63 }
 0x145   :  { %1020 = vst [vmem:[%s1990_s3 + $0xe0] sm:$0xff] %v956_v4  ;;  %v894_v0 = vmul.f32 %v830_v24, %v504_v61  ;;  %v926_v44 = vmul.f32 %v862_v37, %v664_v14  ;;  %v959_v45 = vmul.f32 0.16666667, %v895_v36 }
 0x146   :  { %1052 = vst [vmem:[%s1990_s3 + $0x1e0] sm:$0xff] %v988_v33  ;;  %v991_v1 = vmul.f32 0.16666667, %v927_v38 }
 0x147   :  { %v958_v48 = vmul.f32 0.16666667, %v894_v0  ;;  %v990_v49 = vmul.f32 0.16666667, %v926_v44  ;;  %1023 = vst [vmem:[%s1990_s3 + $0xf8] sm:$0xff] %v959_v45 }
 0x148   :  { %1055 = vst [vmem:[%s1990_s3 + $0x1f8] sm:$0xff] %v991_v1 }
 0x149   :  { %1022 = vst [vmem:[%s1990_s3 + $0xf0] sm:$0xff] %v958_v48  ;;  %1054 = vst [vmem:[%s1990_s3 + $0x1f0] sm:$0xff] %v990_v49 }

</bundles_post_ra>
